<compile_context>
chip_gen: v6e
topology: v6e:2x2x1
jax: 0.10.0
libtpu: 0.0.40
codegen_flags: <defaults>
</compile_context>

<pallas_src>
import functools
import math

import jax
import jax.numpy as jnp
from jax import lax
from jax.experimental import pallas as pl
from jax.experimental.pallas import tpu as pltpu


def _round_up(x: int, m: int) -> int:
    return ((x + m - 1) // m) * m


# --------------------------------------------------------------------------------------
# Path A: table resident in VMEM, on-chip one-hot MXU gather (no per-row DMAs).
# --------------------------------------------------------------------------------------
def _token_embedding_resident_kernel(ids_ref, tbl_ref, out_ref, *, scale):
    """ids_ref: (chunk, 1) int32 VMEM block; tbl_ref: (V_pad, D_pad) resident VMEM table;
    out_ref: (chunk, D_pad) output block."""
    ids = ids_ref[...]                                               # (chunk, 1) int32
    v_pad = tbl_ref.shape[0]
    cols = lax.broadcasted_iota(jnp.int32, (ids.shape[0], v_pad), 1)  # (chunk, V_pad)
    onehot = (ids == cols).astype(tbl_ref.dtype)                     # lane-broadcast compare
    acc = jnp.dot(onehot, tbl_ref[...], preferred_element_type=jnp.float32)
    out_ref[...] = (acc * jnp.float32(scale)).astype(out_ref.dtype)


# --------------------------------------------------------------------------------------
# Path B: table in HBM, cross-step double-buffered per-row DMA gather.
# --------------------------------------------------------------------------------------
def _token_embedding_hbm_gather_kernel(ids_ref, tbl_hbm, out_ref, gbuf, sems, *,
                                       chunk, scale, unroll):
    """ids_ref: (N_pad,) int32 in SMEM (scalar prefetch); tbl_hbm: (V, D_pad) in HBM;
    out_ref: (chunk, D_pad) VMEM block; gbuf: (2*chunk, D_pad) VMEM landing buffer
    (two slots); sems: (2,) DMA semaphores (one per slot)."""
    i = pl.program_id(0)
    n_steps = pl.num_programs(0)
    slot = i % 2

    def issue_chunk(step, dst_slot):
        base = step * chunk
        dst_off = dst_slot * chunk

        def body(t, carry):
            tok = ids_ref[base + t]                    # hoisted SMEM scalar read
            pltpu.make_async_copy(tbl_hbm.at[tok],
                                  gbuf.at[dst_off + t],
                                  sems.at[dst_slot]).start()
            return carry

        lax.fori_loop(0, chunk, body, 0, unroll=unroll)

    # Prologue (first step only): gather this step's own chunk.
    @pl.when(i == 0)
    def _():
        issue_chunk(i, slot)

    # Cross-step pipeline: kick off the NEXT chunk's row DMAs into the other slot
    # before we block on our own — overlaps gather latency with the current store.
    @pl.when(i + 1 < n_steps)
    def _():
        issue_chunk(i + 1, 1 - slot)

    # Drain this slot's `chunk` row copies (all identical size, private semaphore).
    my_off = pl.multiple_of(slot * chunk, 8)

    def wait_body(t, carry):
        # Source index is irrelevant for the wait (size/semaphore keyed); all row copies
        # on this semaphore have identical size, so draining `chunk` of them is exact.
        pltpu.make_async_copy(tbl_hbm.at[0], gbuf.at[my_off + t], sems.at[slot]).wait()
        return carry

    lax.fori_loop(0, chunk, wait_body, 0, unroll=unroll)

    # Single lane-dense store of the whole chunk with sqrt(D) folded in.
    slab = gbuf[pl.ds(my_off, chunk), :]
    out_ref[...] = (slab * jnp.float32(scale)).astype(out_ref.dtype)


# --------------------------------------------------------------------------------------
# Wrapper
# --------------------------------------------------------------------------------------
def token_embedding(tokens, embedding_table, *, chunk=512,
                    resident_table_bytes=24 << 20, max_onehot_vocab=2048,
                    dma_unroll=8, force_hbm_gather=False):
    """tokens: (B, S) int; embedding_table: (V, D) -> (B, S, D), scaled by sqrt(D)."""
    B, S = tokens.shape
    V, D = embedding_table.shape
    N = B * S
    scale = math.sqrt(D)
    itemsize = jnp.dtype(embedding_table.dtype).itemsize

    # Lane-dense layout: pad embed dim to a multiple of 128 (unmasked vst), slice after.
    D_pad = _round_up(D, 128)

    # Token ids -> flat int32. OOB ids clipped (jnp.take semantics; nn.Embedding raises).
    ids = jnp.clip(tokens.reshape(N).astype(jnp.int32), 0, V - 1)

    # Chunk of token rows per grid step: multiple of 8, capped by a VMEM budget
    # (~4 copies of (chunk, D_pad) live on the gather path), and capped so the grid has
    # >= 2 steps when N allows it (keeps v7x's second TensorCore busy on the parallel path).
    chunk = max(8, (int(chunk) // 8) * 8)
    max_chunk_vmem = max(8, (((16 << 20) // (4 * D_pad * itemsize)) // 8) * 8)
    chunk_eff = min(chunk, max_chunk_vmem, _round_up(N, 8))
    if N > 8:
        chunk_eff = min(chunk_eff, _round_up((N + 1) // 2, 8))
    n_pad = _round_up(N, chunk_eff)
    n_steps = n_pad // chunk_eff

    if n_pad != N:
        ids = jnp.concatenate([ids, jnp.zeros((n_pad - N,), jnp.int32)])

    # Resident fast path gate (conservative so it always fits v7x's 64 MiB VMEM).
    V_res = _round_up(V, 128)
    tbl_res_bytes = V_res * D_pad * itemsize
    use_resident = ((not force_hbm_gather)
                    and V_res <= max_onehot_vocab
                    and tbl_res_bytes <= resident_table_bytes)

    out_block_bytes = chunk_eff * D_pad * itemsize

    if use_resident:
        tbl = embedding_table
        if (V_res, D_pad) != (V, D):
            tbl = jnp.zeros((V_res, D_pad), embedding_table.dtype).at[:V, :D].set(embedding_table)
        ids2d = ids.reshape(n_pad, 1)

        vmem_limit = int(min(64 << 20,
                             max(32 << 20, tbl_res_bytes + 4 * out_block_bytes + (8 << 20))))
        kernel = functools.partial(_token_embedding_resident_kernel, scale=scale)
        out_flat = pl.pallas_call(
            kernel,
            out_shape=jax.ShapeDtypeStruct((n_pad, D_pad), embedding_table.dtype),
            grid_spec=pltpu.PrefetchScalarGridSpec(
                num_scalar_prefetch=0,
                grid=(n_steps,),
                in_specs=[
                    pl.BlockSpec((chunk_eff, 1), lambda i: (i, 0)),   # token ids (VMEM)
                    pl.BlockSpec((V_res, D_pad), lambda i: (0, 0)),   # table resident in VMEM
                ],
                out_specs=pl.BlockSpec((chunk_eff, D_pad), lambda i: (i, 0)),
            ),
            compiler_params=pltpu.CompilerParams(
                dimension_semantics=("parallel",),        # independent chunks -> both v7x TCs
                vmem_limit_bytes=vmem_limit,
            ),
        )(ids2d, tbl)
    else:
        tbl = embedding_table
        if D_pad != D:
            tbl = jnp.zeros((V, D_pad), embedding_table.dtype).at[:, :D].set(embedding_table)

        gbuf_bytes = 2 * chunk_eff * D_pad * itemsize
        vmem_limit = int(min(64 << 20,
                             max(32 << 20, gbuf_bytes + 2 * out_block_bytes + (8 << 20))))
        kernel = functools.partial(
            _token_embedding_hbm_gather_kernel,
            chunk=chunk_eff, scale=scale, unroll=int(dma_unroll),
        )
        out_flat = pl.pallas_call(
            kernel,
            out_shape=jax.ShapeDtypeStruct((n_pad, D_pad), embedding_table.dtype),
            grid_spec=pltpu.PrefetchScalarGridSpec(
                num_scalar_prefetch=1,                        # ids -> SMEM
                grid=(n_steps,),
                in_specs=[
                    pl.BlockSpec(memory_space=pl.ANY),        # table stays in HBM, manual DMA
                ],
                out_specs=pl.BlockSpec((chunk_eff, D_pad), lambda i, ids: (i, 0)),
                scratch_shapes=[
                    pltpu.VMEM((2 * chunk_eff, D_pad), embedding_table.dtype),  # 2 gather slots
                    pltpu.SemaphoreType.DMA((2,)),                              # per-slot sems
                ],
            ),
            compiler_params=pltpu.CompilerParams(
                # Cross-step prefetch state carried in scratch -> must run sequentially.
                dimension_semantics=("arbitrary",),
                vmem_limit_bytes=vmem_limit,
            ),
        )(ids, tbl)

    return out_flat[:N, :D].reshape(B, S, D)


if __name__ == "__main__":
    # Small deterministic setup consistent with TokenEmbedding(charset_size, embed_dim).
    charset_size = 97
    embed_dim = 128
    B, S = 2, 8

    key = jax.random.PRNGKey(0)
    k_emb, k_tok = jax.random.split(key)

    embedding_table = jax.random.normal(k_emb, (charset_size, embed_dim), dtype=jnp.float32)
    tokens = jax.random.randint(k_tok, (B, S), 0, charset_size, dtype=jnp.int32)

    # Reference: math.sqrt(embed_dim) * embedding(tokens)
    ref = math.sqrt(embed_dim) * jnp.take(embedding_table, tokens, axis=0)

    # Fast path: table resident in VMEM, on-chip one-hot MXU gather (default for small vocab).
    out = jax.block_until_ready(token_embedding(tokens, embedding_table))
    assert out.shape == (B, S, embed_dim)
    assert jnp.allclose(out, ref, atol=1e-5, rtol=1e-5)

    # Large-vocab path: HBM table, cross-step double-buffered row-DMA gather.
    out_hbm = jax.block_until_ready(
        token_embedding(tokens, embedding_table, force_hbm_gather=True))
    assert jnp.allclose(out_hbm, ref, atol=1e-5, rtol=1e-5)

    print("KERNEL_OK")
</pallas_src>

<mosaic_0001>
module attributes {stable_mosaic.version = 11 : i64} {
  func.func @_token_embedding_resident_kernel(%arg0: i32, %arg1: memref<8x1xi32, #tpu.memory_space<vmem>>, %arg2: memref<128x128xf32, #tpu.memory_space<vmem>>, %arg3: memref<8x128xf32, #tpu.memory_space<vmem>>) attributes {dimension_semantics = [#tpu.dimension_semantics<parallel>], iteration_bounds = array<i64: 2>, scalar_prefetch = 0 : i64, scratch_operands = 0 : i64, tpu.core_type = #tpu.core_type<tc>, window_params = [{transform_indices = @transform_0, window_bounds = array<i64: 8, 1>}, {pipeline_mode = #tpu.pipeline_mode<synchronous>, transform_indices = @transform_1, window_bounds = array<i64: 128, 128>}, {transform_indices = @transform_2, window_bounds = array<i64: 8, 128>}]} {
    %c0 = arith.constant 0 : index
    %c0_0 = arith.constant 0 : index
    %0 = vector.load %arg1[%c0, %c0_0] : memref<8x1xi32, #tpu.memory_space<vmem>>, vector<8x1xi32>
    %1 = tpu.iota {dimensions = array<i32: 1>} : vector<8x128xi32>
    %2 = vector.broadcast %0 : vector<8x1xi32> to vector<8x128xi32>
    %3 = arith.cmpi eq, %2, %1 : vector<8x128xi32>
    %4 = arith.extui %3 : vector<8x128xi1> to vector<8x128xi32>
    %5 = arith.sitofp %4 : vector<8x128xi32> to vector<8x128xf32>
    %c0_1 = arith.constant 0 : index
    %c0_2 = arith.constant 0 : index
    %6 = vector.load %arg2[%c0_1, %c0_2] : memref<128x128xf32, #tpu.memory_space<vmem>>, vector<128x128xf32>
    %cst = arith.constant dense<0.000000e+00> : vector<8x128xf32>
    %7 = tpu.matmul %5, %6, %cst {dimension_numbers = #tpu.dot_dimension_numbers<[1], [0], [0], [1], [0, 0, 1, 1], [], []>} : vector<8x128xf32>, vector<128x128xf32>, vector<8x128xf32> -> vector<8x128xf32>
    %cst_3 = arith.constant 11.3137083 : f32
    %8 = vector.broadcast %cst_3 : f32 to vector<8x128xf32>
    %9 = arith.mulf %7, %8 : vector<8x128xf32>
    %c0_4 = arith.constant 0 : index
    %c0_5 = arith.constant 0 : index
    %10 = vector.load %arg3[%c0_4, %c0_5] : memref<8x128xf32, #tpu.memory_space<vmem>>, vector<8x128xf32>
    tpu.vector_store %arg3[%c0_4, %c0_5], %9 {strides = array<i32>} : memref<8x128xf32, #tpu.memory_space<vmem>>, vector<8x128xf32>,
    return
  }
  func.func @transform_0(%arg0: i32) -> (i32, i32) {
    %c0_i32 = arith.constant 0 : i32
    %c0_i32_0 = arith.constant 0 : i32
    return %arg0, %c0_i32 : i32, i32
  }
  func.func @transform_1(%arg0: i32) -> (i32, i32) {
    %c0_i32 = arith.constant 0 : i32
    %c0_i32_0 = arith.constant 0 : i32
    %c0_i32_1 = arith.constant 0 : i32
    return %c0_i32, %c0_i32_0 : i32, i32
  }
  func.func @transform_2(%arg0: i32) -> (i32, i32) {
    %c0_i32 = arith.constant 0 : i32
    %c0_i32_0 = arith.constant 0 : i32
    return %arg0, %c0_i32 : i32, i32
  }
}

</mosaic_0001>

<bundles_post_ra>
// kernel: tpu_custom_call.1
= control target key start
LH: loop header
LB: loop body
LE: loop exit
PB: predicated region body
PF: predicated region fallthrough
CT: control target
= control target key end

     0   :  { %7 = vsyncpa [#allocation3], 0  ;;  %s685_s0 = inlined_call_operand.vmem [shape: s32[16,1], index: 0, kind: input, shape index: {}]   ;;  %s686_s1 = inlined_call_operand.hbm [shape: f32[128,128], index: 1, kind: input, shape index: {}]   ;;  %s687_s2 = inlined_call_operand.hbm [shape: f32[16,128], index: 2, kind: output, shape index: {}]  }
   0x1   :  { %8 = vsyncpa [#allocation4], 0 }
   0x2   :  { %10 = vsyncpa [#allocation4 + $0x1], 0  ;;  %s574_s9 = smov 0   ;;  %s576_s10 = smov 0  }
   0x3   :  { %s578_s11 = smov 0   ;;  %s580_s12 = smov 0  }
   0x4 LB: > { %s595_s13 = sadd.s32 4294967295, %s549_s12   ;;  %s336_s14 = sadd.s32 4294967294, %s549_s12   ;;  %s549_s12 = sphi %s580_s12, %s695_s12   ;;  %s545_s11 = sphi %s578_s11, %s694_s11   ;;  %s541_s10 = sphi %s576_s10, %s693_s10   ;;  %s537_s9 = sphi %s574_s9, %s692_s9  }
   0x5   : > { %s599_s15 = sadd.s32 1, %s549_s12   ;;  %s70_s16 = sadd.s32 1, %s545_s11 }
   0x6   : > { %s67_s17 = ssub.s32 %s549_s12, %s599_s15  ;;  %p80_p0 = scmp.ne.s32.totalorder %s545_s11, %s541_s10 }
   0x7   : > { %p68_p1 = scmp.eq.s32.totalorder %s67_s17, 0  ;;  %p81_p2 = scmp.eq.s32.totalorder %s595_s13, 1 }
   0x8   : > { %p86_p3 = scmp.ne.s32.totalorder %s541_s10, %s537_s9  ;;  %p87_p4 = scmp.eq.s32.totalorder %s336_s14, 1 }
   0x9   : > { %s610_s18 = scalar_select %p68_p1, %s545_s11, %s70_s16  }
   0xa   : > { %p612_p5 = por %p81_p2, %p80_p0  ;;  %p616_p6 = por %p87_p4, %p86_p3 }
   0xb   : > { %p337_p7 = scmp.ge.s32.totalorder %s549_s12, 1  ;;  %p94_p8 = scmp.lt.s32.totalorder %s549_s12, 3 }
   0xc   : > { %s689_s20 = scalar_select %p616_p6, 1, 0 }
   0xd   : > { %p416_p9 = scmp.eq.s32.totalorder %s595_s13, 0  ;;  %p623_p10 = pnand %p337_p7, %p94_p8 }
   0xe   : > { %s551_s22 = smov [#allocation2]  }
   0xf   : > { %s106_s23 = sshll.u32 %s551_s22, 4  ;;  %p408_p11 = pneg %p623_p10  ;;  %s107_s23 = int_to_ptr.vmem [resolvable:$true] %s106_s23 }
  0x10   : > { %s470_s24 = scalar_lea.vmem %s107_s23, 2048  ;;  %p478_p3 = scmp.lt.s32.totalorder %s107_s23, %s107_s23 }
  0x11   : > { %p409_p12 = pnand %p416_p9, %p408_p11  ;;  %p471_p0 = scmp.ne.s32.totalorder %s107_s23, %s470_s24 }
  0x12   : > { %p479_p4 = scmp.lt.s32.totalorder %s470_s24, %s470_s24 }
  0x13   : > { %p461_p13 = pneg %p409_p12 }
  0x14   : > { %p480_p6 = por %p479_p4, %p478_p3 }
  0x15   : > { %p473_p1 = pnand %p471_p0, %p461_p13 }
  0x17   : > { %p474_p2 = pneg %p473_p1 }
  0x19   : > { %p481_p7 = pnand %p480_p6, %p474_p2 }
  0x1b   : > { %484 = shalt.err (!%p481_p7)
}
  0x1c   : > { %s552_s25 = smov 128   ;;  %s553_s26 = smov 8  }
  0x1d   : > { %411 = dma.hbm_to_vmem [thread:$0]  (!%p409_p12), %s686_s1, 2048, %s107_s23, [#allocation3], %s552_s25, %s552_s25, %s553_s26  }
  0x1e   : > { %129 = sbr.rel (%p623_p10) target bundleno = 376 (0x178), region = 28 }
  0x23   : > { %528 = dma.done.wait (%p416_p9), [#allocation3], 2048  }
  0x24   : > { %530 = vsyncadd (%p416_p9), [#allocation3], 4294965248  ;;  %p150_p8 = scmp.lt.s32.totalorder %s595_s13, 1  ;;  %v554_v0 = vmov 0   ;;  %v555_v1 = vmov 0.0   ;;  %vm556_vm0 = vmmov 0   ;;  %v155_v19 = vlaneseq }
  0x25   : > { %458 = vset.pattern.permute.xlu0 %v554_v0  ;;  %367 = vmatprep.subr.mxu0 %v555_v1  ;;  %v178_v3 = vld [vmem:[#allocation2 + $0x78] sm:$0xff]  ;;  %v177_v4 = vld [vmem:[#allocation2 + $0x70] sm:$0xff]  ;;  %v176_v5 = vld [vmem:[#allocation2 + $0x68] sm:$0xff]  ;;  %v557_v22 = vmov 1.0   ;;  %s147_s6 = sand.u32 1, %s541_s10   ;;  %s347_s8 = sshll.u32 %s595_s13, 7 }
  0x26   : > { %s151_s29 = scalar_select %p150_p8, %s595_s13, 1  ;;  %399 = vmatprep.mubr.msk.f32.mxu0 %vm556_vm0, %v555_v1  ;;  %368 = vmatpush3.msra.mxu0 %v178_v3  ;;  %v175_v6 = vld [vmem:[#allocation2 + $0x60] sm:$0xff]  ;;  %v174_v7 = vld [vmem:[#allocation2 + $0x58] sm:$0xff]  ;;  %v173_v8 = vld [vmem:[#allocation2 + $0x50] sm:$0xff]  ;;  %v156_v20 = vand.u32 127, %v155_v19 }
  0x27   : > { %369 = vmatprep.subr.mxu0 %v555_v1  ;;  %v172_v9 = vld [vmem:[#allocation2 + $0x48] sm:$0xff]  ;;  %v171_v10 = vld [vmem:[#allocation2 + $0x40] sm:$0xff]  ;;  %v170_v11 = vld [vmem:[#allocation2 + $0x38] sm:$0xff]  ;;  %s342_s7 = sshll.u32 %s147_s6, 3  ;;  %s650_s22 = scalar_lea.hbm %s687_s2, %s347_s8 }
  0x28   : > { %s343_s30 = sshll.u32 %s151_s29, 3  ;;  %370 = vmatpush3.msra.mxu0 %v177_v4  ;;  %v169_v12 = vld [vmem:[#allocation2 + $0x30] sm:$0xff]  ;;  %v168_v13 = vld [vmem:[#allocation2 + $0x28] sm:$0xff]  ;;  %v167_v14 = vld [vmem:[#allocation2 + $0x20] sm:$0xff]  ;;  %s149_s14 = scalar_lea.vmem [#allocation5], %s342_s7 }
  0x29   : > { %s153_s5 = scalar_lea.vmem %s685_s0, %s343_s30  ;;  %371 = vmatprep.subr.mxu0 %v555_v1  ;;  %v166_v15 = vld [vmem:[#allocation2 + $0x18] sm:$0xff]  ;;  %v165_v16 = vld [vmem:[#allocation2 + $0x10] sm:$0xff]  ;;  %v164_v17 = vld [vmem:[#allocation2 + $0x8] sm:$0xff]  ;;  %s265_s16 = sshll.u32 %s149_s14, 4  ;;  %s266_s16 = int_to_ptr.vmem [resolvable:$true] %s265_s16 }
  0x2a   : > { %v154_v2 = vld [vmem:[%s153_s5] sm:$0xff]  ;;  %372 = vmatpush3.msra.mxu0 %v176_v5  ;;  %s252_s23 = scalar_lea.sflag [#allocation4], %s147_s6  ;;  %s485_s24 = scalar_lea.vmem %s266_s16, 128 }
  0x2b   : > { %158 = vperm.xlu0 %458, %v154_v2   ;;  %373 = vmatprep.subr.mxu0 %v555_v1  ;;  %v163_v18 = vld [vmem:[#allocation2] sm:$0xff]  ;;  %p486_p6 = scmp.ne.s32.totalorder %s266_s16, %s485_s24  ;;  %s558_s25 = smov [#allocation5]  }
  0x2c   : > { %374 = vmatpush3.msra.mxu0 %v175_v6  ;;  %s489_s13 = sshll.u32 %s558_s25, 4  ;;  %s490_s13 = int_to_ptr.vmem [resolvable:$false] %s489_s13 }
  0x2d   : > { %375 = vmatprep.subr.mxu0 %v555_v1  ;;  %p487_p9 = pnand %p486_p6, %p612_p5  ;;  %s491_s26 = scalar_lea.vmem %s490_s13, 256 }
  0x2e   : > { %376 = vmatpush3.msra.mxu0 %v174_v7  ;;  %p492_p11 = scmp.lt.s32.totalorder %s266_s16, %s490_s13  ;;  %p493_p12 = scmp.lt.s32.totalorder %s491_s26, %s485_s24 }
  0x2f   : > { %377 = vmatprep.subr.mxu0 %v555_v1  ;;  %p488_p10 = pneg %p487_p9 }
  0x30   : > { %378 = vmatpush3.msra.mxu0 %v173_v8  ;;  %p494_p13 = por %p493_p12, %p492_p11 }
  0x31   : > { %379 = vmatprep.subr.mxu0 %v555_v1 }
  0x32   : > { %380 = vmatpush3.msra.mxu0 %v172_v9  ;;  %p495_p0 = pnand %p494_p13, %p488_p10 }
  0x33   : > { %381 = vmatprep.subr.mxu0 %v555_v1 }
  0x34   : > { %382 = vmatpush3.msra.mxu0 %v171_v10 }
  0x35   : > { %383 = vmatprep.subr.mxu0 %v555_v1 }
  0x36   : > { %384 = vmatpush3.msra.mxu0 %v170_v11 }
  0x37   : > { %385 = vmatprep.subr.mxu0 %v555_v1 }
  0x38   : > { %386 = vmatpush3.msra.mxu0 %v169_v12 }
  0x39   : > { %387 = vmatprep.subr.mxu0 %v555_v1 }
  0x3a   : > { %388 = vmatpush3.msra.mxu0 %v168_v13 }
  0x3b   : > { %389 = vmatprep.subr.mxu0 %v555_v1 }
  0x3c   : > { %390 = vmatpush3.msra.mxu0 %v167_v14 }
  0x3d   : > { %391 = vmatprep.subr.mxu0 %v555_v1 }
  0x3e   : > { %392 = vmatpush3.msra.mxu0 %v166_v15 }
  0x3f   : > { %393 = vmatprep.subr.mxu0 %v555_v1 }
  0x40   : > { %394 = vmatpush3.msra.mxu0 %v165_v16 }
  0x41   : > { %395 = vmatprep.subr.mxu0 %v555_v1 }
  0x42   : > { %396 = vmatpush3.msra.mxu0 %v164_v17 }
  0x43   : > { %397 = vmatprep.subr.mxu0 %v555_v1 }
  0x44   : > { %398 = vmatpush3.msra.mxu0 %v163_v18 }
  0xa6   : > { %v159_v21 = vpop.permute.xlu0 %158 }
  0xa7   : > { %vm160_vm1 = vcmp.eq.s32.totalorder %v159_v21, %v156_v20 }
  0xa8   : > { %400 = vmatmul.mubr.msk.f32.vlgmr.msra.gmra.mxu0 %vm160_vm1, %v557_v22 }
 0x168   : > { %v245_v23 = vpop.f32.mrf.mxu0 }
 0x169   : > { %v249_v24 = vmul.f32 11.313708, %v245_v23 }
 0x16a   : > { %v401_v25 = vpop.f32.mrf.mxu0 }
 0x16b   : > { %250 = vst [vmem:[%s149_s14] sm:$0xff] %v249_v24 }
 0x16c   : > { %498 = shalt.err (!%p495_p0)
}
 0x16d   : > { %s499_s27 = scalar_lea.hbm %s650_s22, 128  ;;  %s503_s30 = scalar_lea.hbm %s687_s2, 256 }
 0x16e   : > { %p500_p1 = scmp.ne.s32.totalorder %s650_s22, %s499_s27  ;;  %p504_p4 = scmp.lt.s32.totalorder %s650_s22, %s687_s2 }
 0x16f   : > { %p505_p7 = scmp.lt.s32.totalorder %s503_s30, %s499_s27 }
 0x170   : > { %p501_p2 = pnand %p500_p1, %p612_p5 }
 0x171   : > { %p506_p8 = por %p505_p7, %p504_p4 }
 0x172   : > { %p502_p3 = pneg %p501_p2 }
 0x174   : > { %p507_p6 = pnand %p506_p8, %p502_p3 }
 0x176   : > { %510 = shalt.err (!%p507_p6)
}
 0x177   : > { %406 = dma.vmem_to_hbm [thread:$0]  (%p612_p5), %s266_s16, 128, %s650_s22, %s252_s23  }
 0x178 PF: > { %p418_p9 = scmp.ge.s32.totalorder %s549_s12, 2  ;;  %s277_s5 = sand.u32 1, %s537_s9  }
 0x179   : > { %p691_p10 = scmp.ne.s32.totalorder %s689_s20, 0  ;;  %s278_s6 = scalar_lea.sflag [#allocation4], %s277_s5 }
 0x17b   : > { %p413_p11 = pnand %p418_p9, %p691_p10 }
 0x17d   : > { %p414_p12 = pneg %p413_p11 }
 0x17f   : > { %532 = dma.done.wait (%p414_p12), %s278_s6, 128  }
 0x180   : > { %534 = vsyncadd (%p414_p12), %s278_s6, 4294967168  ;;  %p13_p13 = scmp.ge.s32.totalorder %s599_s15, 4   ;;  %s692_s9 = smov %s541_s10 }
 0x181   : > { %s693_s10 = smov %s545_s11  ;;  %s694_s11 = smov %s610_s18 }
 0x182   : > { %s695_s12 = smov %s599_s15  ;;  %15 = sbr.rel (!%p13_p13) target bundleno = 4 (0x4), region = 68 }
 0x187   :  { %283 = vsyncpa [#allocation3], 1 }
 0x188   :  { %285 = vsyncpa [#allocation3 + $0x1], 1 }
 0x189   :  { %286 = vsyncpa [#allocation4], 1 }
 0x18a   :  { %288 = vsyncpa [#allocation4 + $0x1], 1 }

</bundles_post_ra>
